<compile_context>
chip_gen: v6e
topology: v6e:2x2x1
jax: 0.10.0
libtpu: 0.0.40
codegen_flags: <defaults>
</compile_context>

<pallas_src>
import jax
import jax.numpy as jnp
from jax import lax
from jax.experimental import pallas as pl
from jax.experimental.pallas import tpu as pltpu

EPS = 1e-5
_VMEM_LIMIT_BYTES = 48 * 1024 * 1024   # safe on v5e/v6e (128 MiB) and v7x (64 MiB)
_TILE_BUDGET_BYTES = 6 * 1024 * 1024   # per x tile; in+out double-buffered ~= 4x this


def _pick_channel_tile(n, c, l, itemsize):
    """Largest channel tile TC dividing C with TC % 8 == 0 (or TC == C) whose
    (N, TC, L) tile fits the per-tile VMEM budget."""
    valid = [tc for tc in range(1, c + 1)
             if c % tc == 0 and (tc == c or tc % 8 == 0)]
    fitting = [tc for tc in valid if n * tc * l * itemsize <= _TILE_BUDGET_BYTES]
    return max(fitting) if fitting else min(valid)
    # TODO(synk): if even the smallest channel block exceeds VMEM (huge N*L),
    # add an extra "arbitrary" L-reduction grid axis with accumulator scratch.


def _bn1d_stats_kernel(x_ref, mean_ref, var_ref, nan_ref):
    # x_ref: (N, TC, L) -- full (N, L) extent for this channel block.
    x = x_ref[...].astype(jnp.float32)
    n, tc, l = x.shape
    inv_cnt = jnp.float32(1.0 / (n * l))
    mean = jnp.sum(x, axis=(0, 2), keepdims=True) * inv_cnt          # (1,TC,1)
    centered = x - mean                                              # stable two-moment form
    var = jnp.sum(centered * centered, axis=(0, 2), keepdims=True) * inv_cnt
    nan_any = jnp.max(jnp.isnan(x).astype(jnp.float32),
                      axis=(0, 2), keepdims=True)
    mean_ref[...] = mean.reshape(tc, 1)
    var_ref[...] = var.reshape(tc, 1)
    nan_ref[...] = nan_any.reshape(tc, 1)


def _bn1d_apply_kernel(x_ref, scale_ref, shift_ref, o_ref):
    # Hot path: one mul + one add per element, then store.
    tc = scale_ref.shape[0]
    scale = scale_ref[...].reshape(1, tc, 1)
    shift = shift_ref[...].reshape(1, tc, 1)
    o_ref[...] = (x_ref[...].astype(jnp.float32) * scale + shift).astype(o_ref.dtype)


def batch_norm_1d(x, gamma, beta, eps=EPS, channel_tile=None):
    """x: (N, C, L); gamma, beta: (C,). Training-mode BatchNorm1d forward with
    the module's global NaN pass-through. Returns (N, C, L)."""
    n, c, l = x.shape
    tc = channel_tile if channel_tile is not None else _pick_channel_tile(
        n, c, l, jnp.dtype(x.dtype).itemsize)
    assert c % tc == 0 and (tc == c or tc % 8 == 0), "bad channel tile"
    grid = (c // tc,)

    cparams = pltpu.CompilerParams(
        dimension_semantics=("parallel",),
        vmem_limit_bytes=_VMEM_LIMIT_BYTES,
    )
    x_spec = pl.BlockSpec((n, tc, l), lambda ci: (0, ci, 0))
    cvec_spec = pl.BlockSpec((tc, 1), lambda ci: (ci, 0))

    # ---- Pass 1: per-channel batch statistics + NaN presence (1 HBM sweep) ----
    mean, var, nan_flag = pl.pallas_call(
        _bn1d_stats_kernel,
        out_shape=(jax.ShapeDtypeStruct((c, 1), jnp.float32),
                   jax.ShapeDtypeStruct((c, 1), jnp.float32),
                   jax.ShapeDtypeStruct((c, 1), jnp.float32)),
        grid=grid,
        in_specs=[x_spec],
        out_specs=(cvec_spec, cvec_spec, cvec_spec),
        compiler_params=cparams,
    )(x)

    # ---- Tiny (C,)-sized folding outside the kernel ----
    has_nan = jnp.any(nan_flag > 0.0)
    inv_std = lax.rsqrt(var + jnp.float32(eps))
    g = gamma.reshape(c, 1).astype(jnp.float32)
    b = beta.reshape(c, 1).astype(jnp.float32)
    scale_bn = g * inv_std
    shift_bn = b - mean * scale_bn
    # Global NaN pass-through folded into the constants (identity affine).
    scale = jnp.where(has_nan, jnp.float32(1.0), scale_bn)
    shift = jnp.where(has_nan, jnp.float32(-0.0), shift_bn)

    # ---- Pass 2: y = x * scale + shift (1 HBM read + 1 HBM write) ----
    out = pl.pallas_call(
        _bn1d_apply_kernel,
        out_shape=jax.ShapeDtypeStruct(x.shape, x.dtype),
        grid=grid,
        in_specs=[x_spec, cvec_spec, cvec_spec],
        out_specs=x_spec,
        compiler_params=cparams,
    )(x, scale, shift)
    return out


if __name__ == "__main__":
    k1, k2 = jax.random.split(jax.random.PRNGKey(0))

    def ref_bn(xx, gg, bb):
        cc = xx.shape[1]
        m = jnp.mean(xx, axis=(0, 2), keepdims=True)
        v = jnp.mean((xx - m) ** 2, axis=(0, 2), keepdims=True)
        return (xx - m) / jnp.sqrt(v + EPS) * gg.reshape(1, cc, 1) + bb.reshape(1, cc, 1)

    # Small shape matching the module's (batch, channels, seq) convention.
    N, C, L = 2, 4, 16
    x = jax.random.normal(k1, (N, C, L), dtype=jnp.float32)
    gamma = 1.0 + 0.1 * jnp.arange(C, dtype=jnp.float32)
    beta = 0.05 * jnp.arange(C, dtype=jnp.float32)

    out = batch_norm_1d(x, gamma, beta)
    jax.block_until_ready(out)
    assert jnp.allclose(out, ref_bn(x, gamma, beta), atol=1e-4, rtol=1e-4)

    # Global NaN pass-through: any NaN anywhere -> whole tensor returned unchanged.
    x_nan = x.at[0, 0, 0].set(jnp.nan)
    out_nan = batch_norm_1d(x_nan, gamma, beta)
    jax.block_until_ready(out_nan)
    assert jnp.allclose(out_nan, x_nan, equal_nan=True)

    # Exercise the multi-block (tiled, pipelined) path: 32 channels in 8-channel
    # blocks with a lane-dense (L=128) last axis.
    N2, C2, L2 = 2, 32, 128
    x2 = jax.random.normal(k2, (N2, C2, L2), dtype=jnp.float32)
    gamma2 = jnp.linspace(0.5, 1.5, C2, dtype=jnp.float32)
    beta2 = jnp.linspace(-0.2, 0.2, C2, dtype=jnp.float32)
    out2 = batch_norm_1d(x2, gamma2, beta2, channel_tile=8)
    jax.block_until_ready(out2)
    assert jnp.allclose(out2, ref_bn(x2, gamma2, beta2), atol=1e-4, rtol=1e-4)

    print("KERNEL_OK")
</pallas_src>

<mosaic_0001>
module attributes {stable_mosaic.version = 11 : i64} {
  func.func @_bn1d_stats_kernel(%arg0: i32, %arg1: memref<2x4x16xf32, #tpu.memory_space<vmem>>, %arg2: memref<4x1xf32, #tpu.memory_space<vmem>>, %arg3: memref<4x1xf32, #tpu.memory_space<vmem>>, %arg4: memref<4x1xf32, #tpu.memory_space<vmem>>) attributes {dimension_semantics = [#tpu.dimension_semantics<parallel>], iteration_bounds = array<i64: 1>, scalar_prefetch = 0 : i64, scratch_operands = 0 : i64, tpu.core_type = #tpu.core_type<tc>, window_params = [{transform_indices = @transform_0, window_bounds = array<i64: 2, 4, 16>}, {transform_indices = @transform_1, window_bounds = array<i64: 4, 1>}, {transform_indices = @transform_2, window_bounds = array<i64: 4, 1>}, {transform_indices = @transform_3, window_bounds = array<i64: 4, 1>}]} {
    %c0 = arith.constant 0 : index
    %c0_0 = arith.constant 0 : index
    %c0_1 = arith.constant 0 : index
    %0 = vector.load %arg1[%c0, %c0_0, %c0_1] : memref<2x4x16xf32, #tpu.memory_space<vmem>>, vector<2x4x16xf32>
    %cst = arith.constant dense<0.000000e+00> : vector<4xf32>
    %1 = vector.multi_reduction <add>, %0, %cst [0, 2] : vector<2x4x16xf32> to vector<4xf32>
    %2 = vector.shape_cast %1 : vector<4xf32> to vector<1x4x1xf32>
    %cst_2 = arith.constant 3.125000e-02 : f32
    %3 = vector.broadcast %cst_2 : f32 to vector<1x4x1xf32>
    %4 = arith.mulf %2, %3 : vector<1x4x1xf32>
    %5 = vector.broadcast %4 : vector<1x4x1xf32> to vector<2x4x16xf32>
    %6 = arith.subf %0, %5 : vector<2x4x16xf32>
    %7 = arith.mulf %6, %6 : vector<2x4x16xf32>
    %cst_3 = arith.constant dense<0.000000e+00> : vector<4xf32>
    %8 = vector.multi_reduction <add>, %7, %cst_3 [0, 2] : vector<2x4x16xf32> to vector<4xf32>
    %9 = vector.shape_cast %8 : vector<4xf32> to vector<1x4x1xf32>
    %cst_4 = arith.constant 3.125000e-02 : f32
    %10 = vector.broadcast %cst_4 : f32 to vector<1x4x1xf32>
    %11 = arith.mulf %9, %10 : vector<1x4x1xf32>
    %12 = arith.cmpf one, %0, %0 : vector<2x4x16xf32>
    %13 = arith.extui %12 : vector<2x4x16xi1> to vector<2x4x16xi32>
    %14 = arith.sitofp %13 : vector<2x4x16xi32> to vector<2x4x16xf32>
    %cst_5 = arith.constant dense<0xFF800000> : vector<4xf32>
    %15 = vector.multi_reduction <maximumf>, %14, %cst_5 [0, 2] : vector<2x4x16xf32> to vector<4xf32>
    %16 = vector.shape_cast %15 : vector<4xf32> to vector<1x4x1xf32>
    %17 = vector.shape_cast %4 : vector<1x4x1xf32> to vector<4x1xf32>
    %c0_6 = arith.constant 0 : index
    %c0_7 = arith.constant 0 : index
    %18 = vector.load %arg2[%c0_6, %c0_7] : memref<4x1xf32, #tpu.memory_space<vmem>>, vector<4x1xf32>
    tpu.vector_store %arg2[%c0_6, %c0_7], %17 {strides = array<i32>} : memref<4x1xf32, #tpu.memory_space<vmem>>, vector<4x1xf32>,
    %19 = vector.shape_cast %11 : vector<1x4x1xf32> to vector<4x1xf32>
    %c0_8 = arith.constant 0 : index
    %c0_9 = arith.constant 0 : index
    %20 = vector.load %arg3[%c0_8, %c0_9] : memref<4x1xf32, #tpu.memory_space<vmem>>, vector<4x1xf32>
    tpu.vector_store %arg3[%c0_8, %c0_9], %19 {strides = array<i32>} : memref<4x1xf32, #tpu.memory_space<vmem>>, vector<4x1xf32>,
    %21 = vector.shape_cast %16 : vector<1x4x1xf32> to vector<4x1xf32>
    %c0_10 = arith.constant 0 : index
    %c0_11 = arith.constant 0 : index
    %22 = vector.load %arg4[%c0_10, %c0_11] : memref<4x1xf32, #tpu.memory_space<vmem>>, vector<4x1xf32>
    tpu.vector_store %arg4[%c0_10, %c0_11], %21 {strides = array<i32>} : memref<4x1xf32, #tpu.memory_space<vmem>>, vector<4x1xf32>,
    return
  }
  func.func @transform_0(%arg0: i32) -> (i32, i32, i32) {
    %c0_i32 = arith.constant 0 : i32
    %c0_i32_0 = arith.constant 0 : i32
    %c0_i32_1 = arith.constant 0 : i32
    return %c0_i32, %arg0, %c0_i32_0 : i32, i32, i32
  }
  func.func @transform_1(%arg0: i32) -> (i32, i32) {
    %c0_i32 = arith.constant 0 : i32
    %c0_i32_0 = arith.constant 0 : i32
    return %arg0, %c0_i32 : i32, i32
  }
  func.func @transform_2(%arg0: i32) -> (i32, i32) {
    %c0_i32 = arith.constant 0 : i32
    %c0_i32_0 = arith.constant 0 : i32
    return %arg0, %c0_i32 : i32, i32
  }
  func.func @transform_3(%arg0: i32) -> (i32, i32) {
    %c0_i32 = arith.constant 0 : i32
    %c0_i32_0 = arith.constant 0 : i32
    return %arg0, %c0_i32 : i32, i32
  }
}

</mosaic_0001>

<bundles_post_ra>
// kernel: tpu_custom_call.1
= control target key start
LH: loop header
LB: loop body
LE: loop exit
PB: predicated region body
PF: predicated region fallthrough
CT: control target
= control target key end

     0   :  { %9 = vsyncpa [#allocation3], 0  ;;  %s100_s12 = smov [#allocation2]   ;;  %s142_s0 = inlined_call_operand.hbm [shape: f32[2,4,16], index: 0, kind: input, shape index: {}]   ;;  %s143_s1 = inlined_call_operand.vmem [shape: f32[4,1], index: 1, kind: output, shape index: {0}]   ;;  %s144_s2 = inlined_call_operand.vmem [shape: f32[4,1], index: 2, kind: output, shape index: {1}]   ;;  %s145_s3 = inlined_call_operand.vmem [shape: f32[4,1], index: 3, kind: output, shape index: {2}]  }
   0x1   :  { %s15_s13 = sshll.u32 %s100_s12, 4  ;;  %s16_s13 = int_to_ptr.vmem [resolvable:$true] %s15_s13 }
   0x2   :  { %s86_s14 = scalar_lea.vmem %s16_s13, 128  ;;  %p91_p1 = scmp.lt.s32.totalorder %s16_s13, %s16_s13 }
   0x3   :  { %p87_p0 = scmp.ne.s32.totalorder %s16_s13, %s86_s14  ;;  %p92_p2 = scmp.lt.s32.totalorder %s86_s14, %s86_s14 }
   0x5   :  { %p93_p3 = por %p92_p2, %p91_p1 }
   0x7   :  { %p94_p4 = pnand %p93_p3, %p87_p0 }
   0x9   :  { %97 = shalt.err (!%p94_p4)
}
   0xa   :  { %s101_s15 = smov 64   ;;  %s102_s16 = smov 4  }
   0xb   :  { %21 = dma.hbm_to_vmem [thread:$0]  %s142_s0, 128, %s16_s13, [#allocation3], %s101_s15, %s101_s15, %s102_s16  }
   0xc   :  { %98 = dma.done.wait [#allocation3], 128  }
   0xd   :  { %99 = vsyncadd [#allocation3], 4294967168  ;;  %vm27_vm0 = vcmask 125952   ;;  %v25_v0 = vld [vmem:[#allocation2] sm:$0xf]  ;;  %v103_v5 = vmov 0.0  }
   0xe   :  { %v26_v1 = vld [vmem:[#allocation2 + $0x4] sm:$0xf]  ;;  %v28_v2 = vsel %vm27_vm0, %v25_v0, 0.0  ;;  %vm44_vm1 = vcmp.ne.f32.partialorder %v25_v0, %v25_v0  ;;  %vm55_vm3 = vcmask 3072  }
   0xf   :  { %v29_v3 = vsel %vm27_vm0, %v26_v1, 0.0  ;;  %vm45_vm2 = vcmp.ne.f32.partialorder %v26_v1, %v26_v1  ;;  %v72_v6 = vsel %vm44_vm1, 1.0, %v103_v5 }
  0x10   :  { %v30_v4 = vadd.f32 %v29_v3, %v28_v2  ;;  %v73_v7 = vsel %vm45_vm2, 1.0, %v103_v5  ;;  %v50_v8 = vsel %vm27_vm0, %v72_v6, -inf }
  0x11   :  { %v51_v9 = vsel %vm27_vm0, %v73_v7, -inf }
  0x12   :  { %31 = vadd.xlane.f32.xlu0 %v30_v4  ;;  %v52_v10 = vmax.f32 %v50_v8, %v51_v9 }
  0x14   :  { %53 = vmax.xlane.f32.xlu1 %v52_v10 }
  0x9b   :  { %v32_v11 = vpop.xlane.xlu0 %31 }
  0x9c   :  { %v33_v12 = vmul.f32 0.03125, %v32_v11 }
  0x9d   :  { %v54_v20 = vpop.xlane.xlu1 %53 }
  0x9e   :  { %v34_v13 = vsub.f32 %v25_v0, %v33_v12  ;;  %v35_v14 = vsub.f32 %v26_v1, %v33_v12  ;;  %56 = vst.msk [vmem:[%s143_s1] sm:$0xf] %vm55_vm3, %v33_v12  ;;  %58 = vst.msk [vmem:[%s145_s3] sm:$0xf] %vm55_vm3, %v54_v20 }
  0xa0   :  { %v36_v15 = vmul.f32 %v34_v13, %v34_v13  ;;  %v37_v16 = vmul.f32 %v35_v14, %v35_v14 }
  0xa2   :  { %v38_v17 = vsel %vm27_vm0, %v36_v15, 0.0  ;;  %v39_v18 = vsel %vm27_vm0, %v37_v16, 0.0 }
  0xa3   :  { %v40_v19 = vadd.f32 %v39_v18, %v38_v17 }
  0xa5   :  { %41 = vadd.xlane.f32.xlu0 %v40_v19 }
 0x12e   :  { %v42_v21 = vpop.xlane.xlu0 %41 }
 0x12f   :  { %v43_v22 = vmul.f32 0.03125, %v42_v21 }
 0x131   :  { %57 = vst.msk [vmem:[%s144_s2] sm:$0xf] %vm55_vm3, %v43_v22 }
 0x132   :  { %71 = vsyncpa [#allocation3], 1 }

</bundles_post_ra>
